<compile_context>
chip_gen: v7x
topology: tpu7x:2x2x1
jax: 0.10.0
libtpu: 0.0.40
codegen_flags: <defaults>
</compile_context>

<pallas_src>
import functools

import jax
import jax.numpy as jnp
from jax.experimental import pallas as pl
from jax.experimental.pallas import tpu as pltpu

_LANE = 128


def _round_up(x, m):
    return -(-x // m) * m


def _proto_decoder_kernel(emb_ref, wcat_ref, bcat_ref, psq_ref, out_ref, *, p_pad):
    # emb (TB, E); wcat (E, P_pad + N_pad); bcat (1, P_pad + N_pad); psq (1, N_pad);
    # out (TB, N_pad)
    emb = emb_ref[...].astype(jnp.float32)

    # Single fused MXU pass: [encoded | cross] = emb @ [W^T | W^T prot^T] + [b | b prot^T]
    fused = jnp.dot(emb, wcat_ref[...], preferred_element_type=jnp.float32) + bcat_ref[...]
    encoded = fused[:, :p_pad]     # (TB, P_pad)  -- split is on a 128-lane boundary
    cross = fused[:, p_pad:]       # (TB, N_pad)  == encoded @ prot^T (zero-padded cols)

    enc_sq = jnp.sum(encoded * encoded, axis=-1, keepdims=True)   # (TB, 1) lane reduction
    dist = enc_sq + psq_ref[...] - 2.0 * cross                    # (TB, N_pad)
    dist = jnp.maximum(dist, 0.0)                                 # guard cancellation
    out_ref[...] = (-dist).astype(out_ref.dtype)


def prototypical_decoder_forward(embedded, weight, bias, prototypes, *, tile_b=512):
    """embedded: (B, E); weight: (P, E) torch-Linear layout; bias: (P,);
    prototypes: (N, P). Returns scores: (B, N) float32."""
    B, E = embedded.shape
    P, _ = weight.shape
    N, _ = prototypes.shape

    p_pad = _round_up(P, _LANE)
    n_pad = _round_up(N, _LANE)

    # ---- wrapper-side precompute (all batch-independent) ----
    wt = weight.astype(jnp.float32).T                       # (E, P)
    b32 = bias.astype(jnp.float32)                          # (P,)
    prot = prototypes.astype(jnp.float32)                   # (N, P)

    m = wt @ prot.T                                         # (E, N)  = W^T @ prot^T
    c = b32 @ prot.T                                        # (N,)
    psq = jnp.sum(prot * prot, axis=-1)                     # (N,)    = ||p||^2

    # Lane-pad both halves so the in-kernel split / output store are vreg-aligned.
    w_cat = jnp.concatenate(
        [jnp.pad(wt, ((0, 0), (0, p_pad - P))),
         jnp.pad(m, ((0, 0), (0, n_pad - N)))], axis=1)     # (E, P_pad + N_pad)
    b_cat = jnp.concatenate(
        [jnp.pad(b32, (0, p_pad - P)),
         jnp.pad(c, (0, n_pad - N))]).reshape(1, p_pad + n_pad)
    psq_p = jnp.pad(psq, (0, n_pad - N)).reshape(1, n_pad)  # (1, N_pad)

    # ---- batch tiling: largest tile up to `tile_b`, pad B to a multiple of it ----
    if B <= tile_b:
        tb = B                       # single full-extent block (always BlockSpec-legal)
        b_pad = B
        emb_in = embedded
    else:
        tb = tile_b                  # multiple of 8 (sublane-aligned)
        b_pad = _round_up(B, tb)
        emb_in = jnp.pad(embedded, ((0, b_pad - B), (0, 0))) if b_pad != B else embedded
    grid = (b_pad // tb,)

    kernel = functools.partial(_proto_decoder_kernel, p_pad=p_pad)

    scores = pl.pallas_call(
        kernel,
        out_shape=jax.ShapeDtypeStruct((b_pad, n_pad), jnp.float32),
        grid=grid,
        in_specs=[
            pl.BlockSpec((tb, E), lambda i: (i, 0)),              # batch-tiled activations
            pl.BlockSpec((E, p_pad + n_pad), lambda i: (0, 0)),   # VMEM-resident fused weight
            pl.BlockSpec((1, p_pad + n_pad), lambda i: (0, 0)),   # VMEM-resident fused bias
            pl.BlockSpec((1, n_pad), lambda i: (0, 0)),           # VMEM-resident ||p||^2
        ],
        out_specs=pl.BlockSpec((tb, n_pad), lambda i: (i, 0)),    # lane-dense output block
        compiler_params=pltpu.CompilerParams(
            dimension_semantics=("parallel",)),
    )(emb_in, w_cat, b_cat, psq_p)

    return scores[:B, :N]


def _reference(embedded, weight, bias, prototypes):
    encoded = embedded @ weight.T + bias
    diff = encoded[:, None, :] - prototypes[None, :, :]
    dist = jnp.sum(diff * diff, axis=-1)
    return -dist


if __name__ == "__main__":
    num_prototypes = 8
    embeddings_size = 32
    prototype_size = 16
    batch = 8

    key = jax.random.PRNGKey(0)
    k_emb, k_w, k_b, k_big = jax.random.split(key, 4)

    embedded = jax.random.normal(k_emb, (batch, embeddings_size), dtype=jnp.float32)

    # xavier_uniform_ for Linear weight (out=prototype_size, in=embeddings_size)
    bound_w = (6.0 / (embeddings_size + prototype_size)) ** 0.5
    weight = jax.random.uniform(
        k_w, (prototype_size, embeddings_size), dtype=jnp.float32,
        minval=-bound_w, maxval=bound_w)
    # torch Linear default bias init: U(-1/sqrt(fan_in), 1/sqrt(fan_in))
    bound_b = 1.0 / (embeddings_size ** 0.5)
    bias = jax.random.uniform(
        k_b, (prototype_size,), dtype=jnp.float32, minval=-bound_b, maxval=bound_b)

    # default init: prototype_vectors = ones(num_prototypes, prototype_size)
    prototypes = jnp.ones((num_prototypes, prototype_size), dtype=jnp.float32)

    # Small case (single full-extent block).
    scores = prototypical_decoder_forward(embedded, weight, bias, prototypes)
    scores = jax.block_until_ready(scores)
    ref = _reference(embedded, weight, bias, prototypes)
    assert scores.shape == (batch, num_prototypes)
    assert jnp.allclose(scores, ref, atol=1e-4, rtol=1e-4)

    # Larger batch to exercise the tiled / parallel-grid / batch-padding path (grid length 2).
    big_batch = 600
    embedded_big = jax.random.normal(k_big, (big_batch, embeddings_size), dtype=jnp.float32)
    scores_big = prototypical_decoder_forward(
        embedded_big, weight, bias, prototypes, tile_b=512)
    scores_big = jax.block_until_ready(scores_big)
    ref_big = _reference(embedded_big, weight, bias, prototypes)
    assert scores_big.shape == (big_batch, num_prototypes)
    assert jnp.allclose(scores_big, ref_big, atol=1e-3, rtol=1e-3)

    print("KERNEL_OK")
</pallas_src>

<mosaic_0001>
module attributes {stable_mosaic.version = 11 : i64} {
  func.func @_proto_decoder_kernel(%arg0: i32, %arg1: memref<8x32xf32, #tpu.memory_space<vmem>>, %arg2: memref<32x256xf32, #tpu.memory_space<vmem>>, %arg3: memref<1x256xf32, #tpu.memory_space<vmem>>, %arg4: memref<1x128xf32, #tpu.memory_space<vmem>>, %arg5: memref<8x128xf32, #tpu.memory_space<vmem>>) attributes {dimension_semantics = [#tpu.dimension_semantics<parallel>], iteration_bounds = array<i64: 1>, scalar_prefetch = 0 : i64, scratch_operands = 0 : i64, tpu.core_type = #tpu.core_type<tc>, window_params = [{transform_indices = @transform_0, window_bounds = array<i64: 8, 32>}, {pipeline_mode = #tpu.pipeline_mode<synchronous>, transform_indices = @transform_1, window_bounds = array<i64: 32, 256>}, {pipeline_mode = #tpu.pipeline_mode<synchronous>, transform_indices = @transform_2, window_bounds = array<i64: 1, 256>}, {pipeline_mode = #tpu.pipeline_mode<synchronous>, transform_indices = @transform_3, window_bounds = array<i64: 1, 128>}, {transform_indices = @transform_4, window_bounds = array<i64: 8, 128>}]} {
    %c0 = arith.constant 0 : index
    %c0_0 = arith.constant 0 : index
    %0 = vector.load %arg1[%c0, %c0_0] : memref<8x32xf32, #tpu.memory_space<vmem>>, vector<8x32xf32>
    %c0_1 = arith.constant 0 : index
    %c0_2 = arith.constant 0 : index
    %1 = vector.load %arg2[%c0_1, %c0_2] : memref<32x256xf32, #tpu.memory_space<vmem>>, vector<32x256xf32>
    %cst = arith.constant dense<0.000000e+00> : vector<8x256xf32>
    %2 = tpu.matmul %0, %1, %cst {dimension_numbers = #tpu.dot_dimension_numbers<[1], [0], [0], [1], [0, 0, 1, 1], [], []>} : vector<8x32xf32>, vector<32x256xf32>, vector<8x256xf32> -> vector<8x256xf32>
    %c0_3 = arith.constant 0 : index
    %c0_4 = arith.constant 0 : index
    %3 = vector.load %arg3[%c0_3, %c0_4] : memref<1x256xf32, #tpu.memory_space<vmem>>, vector<1x256xf32>
    %4 = vector.broadcast %3 : vector<1x256xf32> to vector<8x256xf32>
    %5 = arith.addf %2, %4 : vector<8x256xf32>
    %6 = vector.extract_strided_slice %5 {offsets = [0, 0], sizes = [8, 128], strides = [1, 1]} : vector<8x256xf32> to vector<8x128xf32>
    %7 = vector.extract_strided_slice %5 {offsets = [0, 128], sizes = [8, 128], strides = [1, 1]} : vector<8x256xf32> to vector<8x128xf32>
    %8 = arith.mulf %6, %6 : vector<8x128xf32>
    %cst_5 = arith.constant dense<0.000000e+00> : vector<8xf32>
    %9 = vector.multi_reduction <add>, %8, %cst_5 [1] : vector<8x128xf32> to vector<8xf32>
    %10 = vector.shape_cast %9 : vector<8xf32> to vector<8x1xf32>
    %c0_6 = arith.constant 0 : index
    %c0_7 = arith.constant 0 : index
    %11 = vector.load %arg4[%c0_6, %c0_7] : memref<1x128xf32, #tpu.memory_space<vmem>>, vector<1x128xf32>
    %12 = vector.broadcast %10 : vector<8x1xf32> to vector<8x128xf32>
    %13 = vector.broadcast %11 : vector<1x128xf32> to vector<8x128xf32>
    %14 = arith.addf %12, %13 : vector<8x128xf32>
    %cst_8 = arith.constant 2.000000e+00 : f32
    %15 = vector.broadcast %cst_8 : f32 to vector<8x128xf32>
    %16 = arith.mulf %15, %7 : vector<8x128xf32>
    %17 = arith.subf %14, %16 : vector<8x128xf32>
    %cst_9 = arith.constant 0.000000e+00 : f32
    %18 = vector.broadcast %cst_9 : f32 to vector<8x128xf32>
    %19 = arith.maximumf %17, %18 : vector<8x128xf32>
    %cst_10 = arith.constant 0.000000e+00 : f32
    %20 = vector.broadcast %cst_10 : f32 to vector<8x128xf32>
    %21 = arith.subf %20, %19 : vector<8x128xf32>
    %c0_11 = arith.constant 0 : index
    %c0_12 = arith.constant 0 : index
    %22 = vector.load %arg5[%c0_11, %c0_12] : memref<8x128xf32, #tpu.memory_space<vmem>>, vector<8x128xf32>
    tpu.vector_store %arg5[%c0_11, %c0_12], %21 {strides = array<i32>} : memref<8x128xf32, #tpu.memory_space<vmem>>, vector<8x128xf32>,
    return
  }
  func.func @transform_0(%arg0: i32) -> (i32, i32) {
    %c0_i32 = arith.constant 0 : i32
    %c0_i32_0 = arith.constant 0 : i32
    return %arg0, %c0_i32 : i32, i32
  }
  func.func @transform_1(%arg0: i32) -> (i32, i32) {
    %c0_i32 = arith.constant 0 : i32
    %c0_i32_0 = arith.constant 0 : i32
    %c0_i32_1 = arith.constant 0 : i32
    return %c0_i32, %c0_i32_0 : i32, i32
  }
  func.func @transform_2(%arg0: i32) -> (i32, i32) {
    %c0_i32 = arith.constant 0 : i32
    %c0_i32_0 = arith.constant 0 : i32
    %c0_i32_1 = arith.constant 0 : i32
    return %c0_i32, %c0_i32_0 : i32, i32
  }
  func.func @transform_3(%arg0: i32) -> (i32, i32) {
    %c0_i32 = arith.constant 0 : i32
    %c0_i32_0 = arith.constant 0 : i32
    %c0_i32_1 = arith.constant 0 : i32
    return %c0_i32, %c0_i32_0 : i32, i32
  }
  func.func @transform_4(%arg0: i32) -> (i32, i32) {
    %c0_i32 = arith.constant 0 : i32
    %c0_i32_0 = arith.constant 0 : i32
    return %arg0, %c0_i32 : i32, i32
  }
}

</mosaic_0001>

<bundles_post_ra>
// kernel: tpu_custom_call.1
= control target key start
LH: loop header
LB: loop body
LE: loop exit
PB: predicated region body
PF: predicated region fallthrough
CT: control target
= control target key end

     0   :  { %9 = vsyncpa [#allocation3], 0  ;;  %s340_s0 = inlined_call_operand.hbm [shape: f32[8,32], index: 0, kind: input, shape index: {}]   ;;  %s341_s1 = inlined_call_operand.hbm [shape: f32[32,256], index: 1, kind: input, shape index: {}]   ;;  %s342_s2 = inlined_call_operand.vmem [shape: f32[1,256], index: 2, kind: input, shape index: {}]   ;;  %s343_s3 = inlined_call_operand.vmem [shape: f32[1,128], index: 3, kind: input, shape index: {}]   ;;  %s344_s4 = inlined_call_operand.hbm [shape: f32[8,128], index: 4, kind: output, shape index: {}]  }
   0x1   :  { %10 = vsyncpa [#allocation6], 0 }
   0x2   :  { %11 = vsyncpa [#allocation4], 0  ;;  %s260_s15 = smov [#allocation2]   ;;  %s261_s17 = smov [#allocation5]  }
   0x3   :  { %s18_s16 = sshll.u32 %s260_s15, 4  ;;  %s27_s18 = sshll.u32 %s261_s17, 4  ;;  %s19_s16 = int_to_ptr.vmem [resolvable:$true] %s18_s16  ;;  %s291_s18 = int_to_ptr.vmem [resolvable:$true] %s27_s18 }
   0x4   :  { %s188_s21 = scalar_lea.hbm %s340_s0, 128 }
   0x5   :  { %p189_p0 = scmp.ne.s32.totalorder %s340_s0, %s188_s21  ;;  %p192_p1 = scmp.lt.u32.totalorder %s188_s21, %s340_s0 }
   0x7   :  { %p194_p2 = pnand %p192_p1, %p189_p0 }
   0x9   :  { %197 = shalt.err (!%p194_p2)
}
   0xa   :  { %s198_s26 = scalar_lea.vmem %s19_s16, 128  ;;  %p203_p4 = scmp.lt.s32.totalorder %s19_s16, %s19_s16 }
   0xb   :  { %p199_p3 = scmp.ne.s32.totalorder %s19_s16, %s198_s26  ;;  %p204_p5 = scmp.lt.s32.totalorder %s198_s26, %s198_s26 }
   0xd   :  { %p205_p6 = por %p204_p5, %p203_p4 }
   0xf   :  { %p206_p7 = pnand %p205_p6, %p199_p3 }
  0x11   :  { %209 = shalt.err (!%p206_p7)
}
  0x12   :  { %21 = dma.hbm_to_vmem [thread:$0]  %s340_s0, 128, %s19_s16, [#allocation3]  }
  0x13   :  { %s210_s5 = scalar_lea.hbm %s341_s1, 1024 }
  0x14   :  { %p211_p8 = scmp.ne.s32.totalorder %s341_s1, %s210_s5  ;;  %p214_p9 = scmp.lt.u32.totalorder %s210_s5, %s341_s1 }
  0x16   :  { %p216_p10 = pnand %p214_p9, %p211_p8 }
  0x18   :  { %219 = shalt.err (!%p216_p10)
}
  0x19   :  { %s220_s10 = scalar_lea.vmem %s291_s18, 1024  ;;  %p225_p12 = scmp.lt.s32.totalorder %s291_s18, %s291_s18 }
  0x1a   :  { %p221_p11 = scmp.ne.s32.totalorder %s291_s18, %s220_s10  ;;  %p226_p13 = scmp.lt.s32.totalorder %s220_s10, %s220_s10 }
  0x1c   :  { %p227_p0 = por %p226_p13, %p225_p12 }
  0x1e   :  { %p228_p1 = pnand %p227_p0, %p221_p11 }
  0x20   :  { %231 = shalt.err (!%p228_p1)
}
  0x21   :  { %s262_s0 = smov 256   ;;  %s263_s11 = smov 16  }
  0x22   :  { %33 = dma.hbm_to_vmem [thread:$0]  %s341_s1, 1024, %s291_s18, [#allocation6], %s262_s0, %s262_s0, %s263_s11  }
  0x23   :  { %254 = dma.done.wait [#allocation3], 128  }
  0x24   :  { %255 = vsyncadd [#allocation3], 4294967168 }
  0x25   :  { %256 = dma.done.wait [#allocation6], 1024  }
  0x26   :  { %257 = vsyncadd [#allocation6], 4294966272  ;;  %v264_v0 = vmov 0.0   ;;  %v46_v1 = vld [vmem:[#allocation5 + $0x8] sm:$0xff]  ;;  %v48_v2 = vld [vmem:[#allocation5 + $0x18] sm:$0xff]  ;;  %vm65_vm0 = vcmask 261120   ;;  %v55_v14 = vlaneseq }
  0x27   :  { %133 = vmatprep.mubr.f32.mxu0 %v264_v0  ;;  %v45_v3 = vld [vmem:[#allocation5] sm:$0xff]  ;;  %v174_v4 = vpack.c.bf16 %v48_v2, %v46_v1  ;;  %v47_v5 = vld [vmem:[#allocation5 + $0x10] sm:$0xff]  ;;  %v50_v6 = vld [vmem:[#allocation5 + $0x28] sm:$0xff]  ;;  %s265_s17 = smov [#allocation7]  }
  0x28   :  { %v52_v7 = vld [vmem:[#allocation5 + $0x38] sm:$0xff]  ;;  %v176_v8 = vpack.c.bf16 %v47_v5, %v45_v3  ;;  %v49_v10 = vld [vmem:[#allocation5 + $0x20] sm:$0xff]  ;;  %v51_v11 = vld [vmem:[#allocation5 + $0x30] sm:$0xff]  ;;  %v56_v15 = vshrl.u32 %v55_v14, 7 }
  0x29   :  { %v178_v9 = vpack.c.bf16 %v52_v7, %v50_v6  ;;  %175 = vmatprep.subr.bf16.mxu0 %v174_v4  ;;  %v180_v12 = vpack.c.bf16 %v51_v11, %v49_v10  ;;  %v44_v13 = vld [vmem:[#allocation2] sm:$0xff] }
  0x2a   :  { %177 = vmatpush1.bf16.msra.mxu0 %v176_v8  ;;  %v53_v16 = vld [vmem:[%s342_s2] sm:$0x3]  ;;  %v61_v17 = vsub.s32 1, %v56_v15  ;;  %v57_v19 = vsub.s32 0, %v56_v15  ;;  %s162_s2 = sshll.u32 %s265_s17, 4  ;;  %s163_s2 = int_to_ptr.vmem [resolvable:$true] %s162_s2 }
  0x2b   :  { %179 = vmatprep.subr.bf16.mxu0 %v178_v9  ;;  %v173_v26 = vld [vmem:[%s343_s3] ss:$0 sm:$0xff]  ;;  %s232_s18 = scalar_lea.vmem %s163_s2, 128  ;;  %p237_p3 = scmp.lt.s32.totalorder %s163_s2, %s163_s2 }
  0x2c   :  { %v62_v18 = vrot.slane %v53_v16, %v61_v17  ;;  %v58_v20 = vrot.slane %v53_v16, %v57_v19  ;;  %p233_p2 = scmp.ne.s32.totalorder %s163_s2, %s232_s18  ;;  %p238_p4 = scmp.lt.s32.totalorder %s232_s18, %s232_s18 }
  0x2e   :  { %181 = vmatpush1.bf16.msra.mxu0 %v180_v12  ;;  %p239_p5 = por %p238_p4, %p237_p3 }
  0x30   :  { %p240_p6 = pnand %p239_p5, %p233_p2 }
  0x31   :  { %172 = vmatmul.mubr.msk.f32.vlgmr.msra.gmra.mrb[0].mxu0 %vm65_vm0, %v44_v13 }
 0x104   :  { %v135_v21 = vpop.f32.mrb[0].mxu0 }
 0x105   :  { %v137_v22 = vpop.f32.mrb[1].mxu0  ;;  %v136_v23 = vadd.f32 %v135_v21, %v58_v20 }
 0x106   :  { %v138_v24 = vadd.f32 %v137_v22, %v62_v18 }
 0x107   :  { %v140_v25 = vmul.f32 %v136_v23, %v136_v23 }
 0x108   :  { %v151_v28 = vmul.f32 2.0, %v138_v24 }
 0x109   :  { %141 = vadd.xlane.f32.xlu0 %v140_v25 }
 0x196   :  { %v142_v27 = vpop.xlane.xlu0 %141 }
 0x197   :  { %v150_v29 = vadd.f32 %v173_v26, %v142_v27 }
 0x199   :  { %v152_v30 = vsub.f32 %v150_v29, %v151_v28 }
 0x19b   :  { %v153_v31 = vmax.f32 %v152_v30, 0.0 }
 0x19d   :  { %v154_v32 = vsub.f32 0.0, %v153_v31 }
 0x19f   :  { %155 = vst [vmem:[#allocation7] sm:$0xff] %v154_v32 }
 0x1a0   :  { %243 = shalt.err (!%p240_p6)
}
 0x1a1   :  { %s244_s3 = scalar_lea.hbm %s344_s4, 128 }
 0x1a2   :  { %p245_p7 = scmp.ne.s32.totalorder %s344_s4, %s244_s3  ;;  %p248_p8 = scmp.lt.u32.totalorder %s244_s3, %s344_s4 }
 0x1a4   :  { %p250_p9 = pnand %p248_p8, %p245_p7 }
 0x1a6   :  { %253 = shalt.err (!%p250_p9)
}
 0x1a7   :  { %165 = dma.vmem_to_hbm [thread:$0]  %s163_s2, 128, %s344_s4, [#allocation4]  }
 0x1a8   :  { %258 = dma.done.wait [#allocation4], 128  }
 0x1a9   :  { %259 = vsyncadd [#allocation4], 4294967168 }
 0x1aa   :  { %169 = vsyncpa [#allocation3], 1 }
 0x1ab   :  { %170 = vsyncpa [#allocation6], 1 }
 0x1ac   :  { %171 = vsyncpa [#allocation4], 1 }

</bundles_post_ra>
